<compile_context>
chip_gen: v7x
topology: tpu7x:2x2x1
jax: 0.10.0
libtpu: 0.0.40
codegen_flags: <defaults>
</compile_context>

<pallas_src>
import math
from functools import partial

import jax
import jax.numpy as jnp
from jax.experimental import pallas as pl
from jax.experimental.pallas import tpu as pltpu  # noqa: F401  (not needed: zero-byte pass-through)


def _identity_kernel(x_hbm, o_hbm):
    # Output buffer is aliased to the input buffer (input_output_aliases),
    # so the data is already in place: nothing to load, store, or DMA.
    # (pltpu.touch(o_hbm) could pin ordering if ever needed; not required.)
    # TODO(synk): the shape reinterpretation itself is pure metadata with no
    # Pallas op; it is applied with jnp.reshape outside the kernel.
    del x_hbm, o_hbm


def _pallas_view_passthrough(x):
    """Zero-byte Pallas pass-through: output HBM buffer aliases the input."""
    return pl.pallas_call(
        _identity_kernel,
        out_shape=jax.ShapeDtypeStruct(x.shape, x.dtype),
        in_specs=[pl.BlockSpec(memory_space=pl.ANY)],   # stay in HBM, no VMEM
        out_specs=pl.BlockSpec(memory_space=pl.ANY),
        input_output_aliases={0: 0},                    # out buffer == in buffer
        cost_estimate=pl.CostEstimate(                  # free: no flops, no bytes
            flops=0, transcendentals=0, bytes_accessed=0),
    )(x)


def _resolve_shape(total, shape):
    """Resolve a single -1 entry, matching torch.Tensor.view semantics."""
    shape = list(shape)
    neg = [i for i, s in enumerate(shape) if s == -1]
    if len(neg) > 1:
        raise ValueError("only one -1 allowed in shape")
    if neg:
        known = math.prod(s for s in shape if s != -1)
        if known == 0 or total % known != 0:
            raise ValueError(f"cannot view {total} elements as {tuple(shape)}")
        shape[neg[0]] = total // known
    if math.prod(shape) != total:
        raise ValueError(f"cannot view {total} elements as {tuple(shape)}")
    return tuple(shape)


@partial(jax.jit, static_argnums=(1,), donate_argnums=(0,))
def _reshape_impl(x, out_shape):
    if x.size == 0:
        # Zero-element tensor: nothing to alias or move; metadata-only.
        return jnp.reshape(x, out_shape)
    # Zero-byte aliased pass-through through the Pallas entry point ...
    y = _pallas_view_passthrough(x)
    # ... then the view itself, which is free metadata (bitcast) in XLA.
    return jnp.reshape(y, out_shape)


class Reshape:
    """JAX/Pallas port of the PyTorch Reshape module (x.view(self.shape)).

    Like torch's .view, no element copy is performed.  The input buffer is
    donated to the call (input_output_aliases + donate_argnums), so callers
    should treat `x` as consumed after the call.
    """

    def __init__(self, *args):
        self.shape = args

    def __call__(self, x):
        out_shape = _resolve_shape(x.size, self.shape)
        return _reshape_impl(x, out_shape)


if __name__ == "__main__":
    # Example consistent with the VAE usage: flatten an NCHW feature map
    # into (batch, features) before a linear layer.
    key = jax.random.PRNGKey(0)
    x = jax.random.normal(key, (2, 4, 16, 16), dtype=jnp.float32)  # NCHW
    in_dtype = x.dtype

    # Compute the reference BEFORE the call: `x` is donated into the kernel
    # (zero-copy aliasing), so its buffer is consumed by the call.
    ref = jax.block_until_ready(jnp.reshape(x, (-1, 4 * 16 * 16)))

    reshape = Reshape(-1, 4 * 16 * 16)  # -> (2, 1024)
    y = reshape(x)
    y = jax.block_until_ready(y)

    # Correctness check against plain JAX reshape (== torch .view semantics).
    assert y.shape == (2, 1024), y.shape
    assert y.dtype == in_dtype
    assert bool(jnp.array_equal(y, ref))

    print("KERNEL_OK")
</pallas_src>

<mosaic_0001>
module attributes {stable_mosaic.version = 11 : i64} {
  func.func @_identity_kernel(%arg0: memref<2x4x16x16xf32, #tpu.memory_space<any>>, %arg1: memref<2x4x16x16xf32, #tpu.memory_space<any>>) attributes {dimension_semantics = [], scalar_prefetch = 0 : i64, scratch_operands = 0 : i64, tpu.core_type = #tpu.core_type<tc>} {
    return
  }
}

</mosaic_0001>

<bundles_post_ra>
// kernel: _reshape_impl.1
= control target key start
LH: loop header
LB: loop body
LE: loop exit
PB: predicated region body
PF: predicated region fallthrough
CT: control target
= control target key end

     0   :  { %s16_s0 = inlined_call_operand.vmem [shape: f32[2,4,16,16], index: 0, kind: input, shape index: {}, may-alias: {0,1}]   ;;  %s17_s1 = inlined_call_operand.vmem [shape: f32[2,4,16,16], index: 1, kind: output, shape index: {}, may-alias: {0,1}]  }

</bundles_post_ra>
